<compile_context>
chip_gen: v7x
topology: tpu7x:2x2x1
jax: 0.10.0
libtpu: 0.0.40
codegen_flags: <defaults>
</compile_context>

<pallas_src>
import functools

import numpy as np
import jax
import jax.numpy as jnp
from jax import lax
from jax.experimental import pallas as pl
from jax.experimental.pallas import tpu as pltpu


def _val2bins_kernel(x_ref, off_ref, o_ref, *, coeff: float, bins: int, pack: int):
    # x_ref   : (bm, pack)       f32  -- `pack` consecutive flat input values / row
    # off_ref : (1, pack*bins)   f32  -- bin centers tiled `pack` times along lanes
    # o_ref   : (bm, pack*bins)       -- lanes [j*bins,(j+1)*bins) = softmax of col j
    lanes = o_ref.shape[1]

    x = x_ref[...]                      # (bm, pack)
    off = off_ref[...]                  # (1, lanes)

    if pack == 1:
        # Single value per row: plain per-row softmax over the lane axis.
        d = x[:, 0:1] - off                             # (bm, lanes)
        xn = (d * d) * coeff
        m = jnp.max(xn, axis=-1, keepdims=True)
        e = jnp.exp(xn - m)
        s = jnp.sum(e, axis=-1, keepdims=True)
        o_ref[...] = (e * pl.reciprocal(s, approx=False)).astype(o_ref.dtype)
        return

    # Lane-segment masks on a (1, lanes) iota; broadcast over sublanes in where.
    lane = lax.broadcasted_iota(jnp.int32, (1, lanes), 1)
    masks = [(lane >= j * bins) & (lane < (j + 1) * bins) for j in range(pack)]

    def combine(cols):
        # cols: list of `pack` arrays of shape (bm, 1); place cols[j] in segment j.
        acc = cols[pack - 1]
        for j in range(pack - 1):
            acc = jnp.where(masks[j], cols[j], acc)
        return acc                      # (bm, lanes)

    # Broadcast each packed input value across its own `bins`-wide lane segment.
    xb = combine([x[:, j:j + 1] for j in range(pack)])

    # Same association as the reference: coeff * (x - offset)**2
    d = xb - off                        # (bm, lanes), lane-dense
    xn = (d * d) * coeff

    # Per-segment numerically-stable softmax (each segment is an independent row
    # of the original problem, so it needs its own max / sum).
    neg_inf = jnp.float32(-jnp.inf)
    m = [jnp.max(jnp.where(masks[j], xn, neg_inf), axis=-1, keepdims=True)
         for j in range(pack)]
    e = jnp.exp(xn - combine(m))

    s = [jnp.sum(jnp.where(masks[j], e, 0.0), axis=-1, keepdims=True)
         for j in range(pack)]
    r = combine([pl.reciprocal(sj, approx=False) for sj in s])

    o_ref[...] = (e * r).astype(o_ref.dtype)


def val2cont_bins(dist_x: jax.Array, x_offset: jax.Array, coeff: float,
                  *, block_rows: int = 8192,
                  out_dtype=jnp.float32) -> jax.Array:
    """Pallas implementation of Val2ContBins.forward."""
    orig_shape = dist_x.shape
    bins = int(x_offset.shape[0])

    # Pack factor: how many input values share one 128-lane register row.
    pack = 128 // bins if (bins <= 128 and 128 % bins == 0) else 1
    lanes = pack * bins

    flat = dist_x.reshape(-1).astype(jnp.float32)
    n = int(flat.shape[0])

    # Pad only to the packing granularity (8 sublanes * pack), NOT to the tile
    # size; ragged last tiles are handled by Pallas' masked writeback.
    gran = 8 * pack
    n_pad = -n % gran
    if n_pad:
        flat = jnp.pad(flat, (0, n_pad))
    rows = (n + n_pad) // pack                         # packed row count (mult of 8)

    x2d = flat.reshape(rows, pack)                     # (rows, pack)
    off2d = jnp.tile(x_offset.astype(jnp.float32), pack).reshape(1, lanes)

    bm = min(block_rows, rows)                         # both multiples of 8
    grid = (pl.cdiv(rows, bm),)

    kernel = functools.partial(_val2bins_kernel, coeff=float(coeff),
                               bins=bins, pack=pack)

    cost = pl.CostEstimate(
        flops=6 * n * bins,
        transcendentals=n * bins,
        bytes_accessed=n * 4 + lanes * 4
        + n * bins * jnp.dtype(out_dtype).itemsize)

    out = pl.pallas_call(
        kernel,
        out_shape=jax.ShapeDtypeStruct((rows, lanes), out_dtype),
        grid_spec=pltpu.PrefetchScalarGridSpec(
            num_scalar_prefetch=0,
            grid=grid,
            in_specs=[
                pl.BlockSpec((bm, pack), lambda i: (i, 0)),
                pl.BlockSpec((1, lanes), lambda i: (0, 0)),
            ],
            out_specs=pl.BlockSpec((bm, lanes), lambda i: (i, 0)),
        ),
        compiler_params=pltpu.CompilerParams(
            dimension_semantics=("parallel",),
            vmem_limit_bytes=32 * 1024 * 1024),
        cost_estimate=cost,
    )(x2d, off2d)

    out = out.reshape(rows * pack, bins)               # free contiguous reshape
    if n_pad:
        out = out[:n]
    return out.reshape(*orig_shape, bins)


def _reference(dist_x, x_offset, coeff):
    x = dist_x[..., None].astype(jnp.float32) - x_offset.reshape(
        (1,) * dist_x.ndim + (-1,))
    xn = coeff * (x * x)
    xn = xn - jnp.max(xn, axis=-1, keepdims=True)
    return jax.nn.softmax(xn, axis=-1)


if __name__ == "__main__":
    # --- deterministic "config" (mirrors cfg.x_min / cfg.x_max / cfg.x_bins) ---
    x_min, x_max, x_bins = 2.0, 22.0, 64
    x_bin_size = (x_max - x_min) / (x_bins - 2)
    x_offset = jnp.asarray(
        np.linspace(x_min - x_bin_size / 2, x_max + x_bin_size / 2, x_bins),
        dtype=jnp.float32)
    coeff = -0.5 / (x_bin_size * 0.2) ** 2

    # --- deterministic small input: dist_x of shape (2, 8, 8) ---
    key = jax.random.PRNGKey(0)
    dist_x = jax.random.uniform(key, (2, 8, 8), dtype=jnp.float32,
                                minval=x_min - 1.0, maxval=x_max + 1.0)

    logits = val2cont_bins(dist_x, x_offset, coeff)
    logits = jax.block_until_ready(logits)

    ref = _reference(dist_x, x_offset, coeff)
    assert logits.shape == dist_x.shape + (x_bins,)
    assert jnp.allclose(logits, ref, atol=1e-5, rtol=1e-5), "mismatch vs reference"
    assert jnp.allclose(jnp.sum(logits, axis=-1), 1.0, atol=1e-5)

    print("KERNEL_OK")
</pallas_src>

<mosaic_0001>
module attributes {stable_mosaic.version = 11 : i64} {
  func.func @_val2bins_kernel(%arg0: i32, %arg1: memref<64x2xf32, #tpu.memory_space<vmem>>, %arg2: memref<1x128xf32, #tpu.memory_space<vmem>>, %arg3: memref<64x128xf32, #tpu.memory_space<vmem>>) attributes {dimension_semantics = [#tpu.dimension_semantics<parallel>], iteration_bounds = array<i64: 1>, scalar_prefetch = 0 : i64, scratch_operands = 0 : i64, tpu.core_type = #tpu.core_type<tc>, window_params = [{transform_indices = @transform_0, window_bounds = array<i64: 64, 2>}, {pipeline_mode = #tpu.pipeline_mode<synchronous>, transform_indices = @transform_1, window_bounds = array<i64: 1, 128>}, {transform_indices = @transform_2, window_bounds = array<i64: 64, 128>}]} {
    %c0 = arith.constant 0 : index
    %c0_0 = arith.constant 0 : index
    %0 = vector.load %arg1[%c0, %c0_0] : memref<64x2xf32, #tpu.memory_space<vmem>>, vector<64x2xf32>
    %c0_1 = arith.constant 0 : index
    %c0_2 = arith.constant 0 : index
    %1 = vector.load %arg2[%c0_1, %c0_2] : memref<1x128xf32, #tpu.memory_space<vmem>>, vector<1x128xf32>
    %2 = tpu.iota {dimensions = array<i32: 1>} : vector<1x128xi32>
    %c0_i32 = arith.constant 0 : i32
    %3 = vector.broadcast %c0_i32 : i32 to vector<1x128xi32>
    %4 = arith.cmpi sge, %2, %3 : vector<1x128xi32>
    %c64_i32 = arith.constant 64 : i32
    %5 = vector.broadcast %c64_i32 : i32 to vector<1x128xi32>
    %6 = arith.cmpi slt, %2, %5 : vector<1x128xi32>
    %7 = arith.andi %4, %6 : vector<1x128xi1>
    %c64_i32_3 = arith.constant 64 : i32
    %8 = vector.broadcast %c64_i32_3 : i32 to vector<1x128xi32>
    %9 = arith.cmpi sge, %2, %8 : vector<1x128xi32>
    %c128_i32 = arith.constant 128 : i32
    %10 = vector.broadcast %c128_i32 : i32 to vector<1x128xi32>
    %11 = arith.cmpi slt, %2, %10 : vector<1x128xi32>
    %12 = arith.andi %9, %11 : vector<1x128xi1>
    %13 = vector.extract_strided_slice %0 {offsets = [0, 0], sizes = [64, 1], strides = [1, 1]} : vector<64x2xf32> to vector<64x1xf32>
    %14 = vector.extract_strided_slice %0 {offsets = [0, 1], sizes = [64, 1], strides = [1, 1]} : vector<64x2xf32> to vector<64x1xf32>
    %15 = vector.shape_cast %7 : vector<1x128xi1> to vector<1x128xi1>
    %16 = vector.broadcast %15 : vector<1x128xi1> to vector<64x128xi1>
    %17 = vector.shape_cast %13 : vector<64x1xf32> to vector<64x1xf32>
    %18 = vector.broadcast %17 : vector<64x1xf32> to vector<64x128xf32>
    %19 = vector.shape_cast %14 : vector<64x1xf32> to vector<64x1xf32>
    %20 = vector.broadcast %19 : vector<64x1xf32> to vector<64x128xf32>
    %21 = arith.select %16, %18, %20 : vector<64x128xi1>, vector<64x128xf32>
    %22 = vector.broadcast %1 : vector<1x128xf32> to vector<64x128xf32>
    %23 = arith.subf %21, %22 : vector<64x128xf32>
    %24 = arith.mulf %23, %23 : vector<64x128xf32>
    %cst = arith.constant -1.201250e+02 : f32
    %25 = vector.broadcast %cst : f32 to vector<64x128xf32>
    %26 = arith.mulf %24, %25 : vector<64x128xf32>
    %cst_4 = arith.constant 0xFF800000 : f32
    %27 = vector.shape_cast %7 : vector<1x128xi1> to vector<1x128xi1>
    %28 = vector.broadcast %27 : vector<1x128xi1> to vector<64x128xi1>
    %29 = vector.broadcast %cst_4 : f32 to vector<64x128xf32>
    %30 = arith.select %28, %26, %29 : vector<64x128xi1>, vector<64x128xf32>
    %cst_5 = arith.constant dense<0xFF800000> : vector<64xf32>
    %31 = vector.multi_reduction <maximumf>, %30, %cst_5 [1] : vector<64x128xf32> to vector<64xf32>
    %32 = vector.shape_cast %31 : vector<64xf32> to vector<64x1xf32>
    %cst_6 = arith.constant 0xFF800000 : f32
    %33 = vector.shape_cast %12 : vector<1x128xi1> to vector<1x128xi1>
    %34 = vector.broadcast %33 : vector<1x128xi1> to vector<64x128xi1>
    %35 = vector.broadcast %cst_6 : f32 to vector<64x128xf32>
    %36 = arith.select %34, %26, %35 : vector<64x128xi1>, vector<64x128xf32>
    %cst_7 = arith.constant dense<0xFF800000> : vector<64xf32>
    %37 = vector.multi_reduction <maximumf>, %36, %cst_7 [1] : vector<64x128xf32> to vector<64xf32>
    %38 = vector.shape_cast %37 : vector<64xf32> to vector<64x1xf32>
    %39 = vector.shape_cast %7 : vector<1x128xi1> to vector<1x128xi1>
    %40 = vector.broadcast %39 : vector<1x128xi1> to vector<64x128xi1>
    %41 = vector.shape_cast %32 : vector<64x1xf32> to vector<64x1xf32>
    %42 = vector.broadcast %41 : vector<64x1xf32> to vector<64x128xf32>
    %43 = vector.shape_cast %38 : vector<64x1xf32> to vector<64x1xf32>
    %44 = vector.broadcast %43 : vector<64x1xf32> to vector<64x128xf32>
    %45 = arith.select %40, %42, %44 : vector<64x128xi1>, vector<64x128xf32>
    %46 = arith.subf %26, %45 : vector<64x128xf32>
    %47 = math.exp %46 : vector<64x128xf32>
    %cst_8 = arith.constant 0.000000e+00 : f32
    %48 = vector.shape_cast %7 : vector<1x128xi1> to vector<1x128xi1>
    %49 = vector.broadcast %48 : vector<1x128xi1> to vector<64x128xi1>
    %50 = vector.broadcast %cst_8 : f32 to vector<64x128xf32>
    %51 = arith.select %49, %47, %50 : vector<64x128xi1>, vector<64x128xf32>
    %cst_9 = arith.constant dense<0.000000e+00> : vector<64xf32>
    %52 = vector.multi_reduction <add>, %51, %cst_9 [1] : vector<64x128xf32> to vector<64xf32>
    %53 = vector.shape_cast %52 : vector<64xf32> to vector<64x1xf32>
    %cst_10 = arith.constant 0.000000e+00 : f32
    %54 = vector.shape_cast %12 : vector<1x128xi1> to vector<1x128xi1>
    %55 = vector.broadcast %54 : vector<1x128xi1> to vector<64x128xi1>
    %56 = vector.broadcast %cst_10 : f32 to vector<64x128xf32>
    %57 = arith.select %55, %47, %56 : vector<64x128xi1>, vector<64x128xf32>
    %cst_11 = arith.constant dense<0.000000e+00> : vector<64xf32>
    %58 = vector.multi_reduction <add>, %57, %cst_11 [1] : vector<64x128xf32> to vector<64xf32>
    %59 = vector.shape_cast %58 : vector<64xf32> to vector<64x1xf32>
    %60 = tpu.reciprocal %53 : vector<64x1xf32> -> vector<64x1xf32>
    %61 = tpu.reciprocal %59 : vector<64x1xf32> -> vector<64x1xf32>
    %62 = vector.shape_cast %7 : vector<1x128xi1> to vector<1x128xi1>
    %63 = vector.broadcast %62 : vector<1x128xi1> to vector<64x128xi1>
    %64 = vector.shape_cast %60 : vector<64x1xf32> to vector<64x1xf32>
    %65 = vector.broadcast %64 : vector<64x1xf32> to vector<64x128xf32>
    %66 = vector.shape_cast %61 : vector<64x1xf32> to vector<64x1xf32>
    %67 = vector.broadcast %66 : vector<64x1xf32> to vector<64x128xf32>
    %68 = arith.select %63, %65, %67 : vector<64x128xi1>, vector<64x128xf32>
    %69 = arith.mulf %47, %68 : vector<64x128xf32>
    %c0_12 = arith.constant 0 : index
    %c0_13 = arith.constant 0 : index
    %70 = vector.load %arg3[%c0_12, %c0_13] : memref<64x128xf32, #tpu.memory_space<vmem>>, vector<64x128xf32>
    tpu.vector_store %arg3[%c0_12, %c0_13], %69 {strides = array<i32>} : memref<64x128xf32, #tpu.memory_space<vmem>>, vector<64x128xf32>,
    return
  }
  func.func @transform_0(%arg0: i32) -> (i32, i32) {
    %c0_i32 = arith.constant 0 : i32
    %c0_i32_0 = arith.constant 0 : i32
    return %arg0, %c0_i32 : i32, i32
  }
  func.func @transform_1(%arg0: i32) -> (i32, i32) {
    %c0_i32 = arith.constant 0 : i32
    %c0_i32_0 = arith.constant 0 : i32
    %c0_i32_1 = arith.constant 0 : i32
    return %c0_i32, %c0_i32_0 : i32, i32
  }
  func.func @transform_2(%arg0: i32) -> (i32, i32) {
    %c0_i32 = arith.constant 0 : i32
    %c0_i32_0 = arith.constant 0 : i32
    return %arg0, %c0_i32 : i32, i32
  }
}

</mosaic_0001>

<bundles_post_ra>
// kernel: tpu_custom_call.1
= control target key start
LH: loop header
LB: loop body
LE: loop exit
PB: predicated region body
PF: predicated region fallthrough
CT: control target
= control target key end

     0   :  { %v409_v2 = vmov 0   ;;  %s664_s0 = inlined_call_operand.vmem [shape: f32[64,2], index: 0, kind: input, shape index: {}]   ;;  %s665_s1 = inlined_call_operand.vmem [shape: f32[1,128], index: 1, kind: input, shape index: {}]   ;;  %s666_s2 = inlined_call_operand.hbm [shape: f32[64,128], index: 2, kind: output, shape index: {}]  }
   0x1   :  { %v14_v0 = vld [vmem:[%s664_s0 + $0x10] sm:$0xff]  ;;  %v12_v1 = vld [vmem:[%s664_s0] sm:$0xff]  ;;  %334 = vset.pattern.permute.xlu1 %v409_v2  ;;  %333 = vset.pattern.permute.xlu0 %v409_v2 }
   0x2   :  { %43 = vperm.xlu1 %334, %v14_v0   ;;  %33 = vperm.xlu0 %333, %v12_v1  }
   0x3   :  { %7 = vsyncpa [#allocation3], 0  ;;  %v15_v3 = vld [vmem:[%s664_s0 + $0x18] sm:$0xff]  ;;  %v13_v4 = vld [vmem:[%s664_s0 + $0x8] sm:$0xff]  ;;  %v410_v9 = vmov 1   ;;  %v21_v14 = vlaneseq }
   0x4   :  { %v17_v5 = vld [vmem:[%s664_s0 + $0x28] sm:$0xff]  ;;  %v16_v6 = vld [vmem:[%s664_s0 + $0x20] sm:$0xff]  ;;  %v19_v7 = vld [vmem:[%s664_s0 + $0x38] sm:$0xff] }
   0x5   :  { %v18_v8 = vld [vmem:[%s664_s0 + $0x30] sm:$0xff]  ;;  %v453_v17 = vand.u32 127, %v21_v14  ;;  %v327_v20 = vld [vmem:[%s665_s1] ss:$0 sm:$0xff]  ;;  %s411_s1 = smov [#allocation2]  }
   0x6   :  { %48 = vperm.xlu1 %334, %v15_v3   ;;  %38 = vperm.xlu0 %333, %v13_v4   ;;  %s316_s26 = sshll.u32 %s411_s1, 4  ;;  %s317_s26 = int_to_ptr.vmem [resolvable:$true] %s316_s26 }
   0x7   :  { %vm24_vm0 = vcmp.lt.s32.totalorder %v453_v17, 64  ;;  %vm26_vm1 = vcmp.ge.s32.totalorder %v453_v17, 64  ;;  %s385_s27 = scalar_lea.vmem %s317_s26, 1024  ;;  %p390_p1 = scmp.lt.s32.totalorder %s317_s26, %s317_s26 }
   0x8   :  { %p386_p0 = scmp.ne.s32.totalorder %s317_s26, %s385_s27  ;;  %p391_p2 = scmp.lt.s32.totalorder %s385_s27, %s385_s27 }
   0xa   :  { %58 = vperm.xlu1 %334, %v17_v5   ;;  %53 = vperm.xlu0 %333, %v16_v6   ;;  %p392_p3 = por %p391_p2, %p390_p1 }
   0xc   :  { %p393_p4 = pnand %p392_p3, %p386_p0 }
   0xe   :  { %68 = vperm.xlu1 %334, %v19_v7   ;;  %63 = vperm.xlu0 %333, %v18_v8  }
  0x12   :  { %336 = vset.pattern.permute.xlu1 %v410_v9  ;;  %335 = vset.pattern.permute.xlu0 %v410_v9 }
  0x13   :  { %76 = vperm.xlu1 %336, %v13_v4   ;;  %72 = vperm.xlu0 %335, %v12_v1  }
  0x17   :  { %80 = vperm.xlu1 %336, %v14_v0   ;;  %84 = vperm.xlu0 %335, %v15_v3  }
  0x1b   :  { %88 = vperm.xlu1 %336, %v16_v6   ;;  %92 = vperm.xlu0 %335, %v17_v5  }
  0x1f   :  { %96 = vperm.xlu1 %336, %v18_v8   ;;  %100 = vperm.xlu0 %335, %v19_v7  }
  0x81   :  { %v44_v10 = vpop.permute.xlu1 %43  ;;  %v34_v11 = vpop.permute.xlu0 %33 }
  0x85   :  { %v49_v12 = vpop.permute.xlu1 %48  ;;  %v39_v13 = vpop.permute.xlu0 %38 }
  0x89   :  { %v59_v15 = vpop.permute.xlu1 %58  ;;  %v54_v16 = vpop.permute.xlu0 %53 }
  0x8d   :  { %v69_v18 = vpop.permute.xlu1 %68  ;;  %v64_v19 = vpop.permute.xlu0 %63 }
  0x92   :  { %v77_v21 = vpop.permute.xlu1 %76  ;;  %v73_v22 = vpop.permute.xlu0 %72 }
  0x93   :  { %v104_v23 = vsel %vm24_vm0, %v39_v13, %v77_v21  ;;  %v103_v24 = vsel %vm24_vm0, %v34_v11, %v73_v22 }
  0x94   :  { %v118_v25 = vsub.f32 %v104_v23, %v327_v20  ;;  %v117_v26 = vsub.f32 %v103_v24, %v327_v20 }
  0x96   :  { %v126_v27 = vmul.f32 %v118_v25, %v118_v25  ;;  %v125_v28 = vmul.f32 %v117_v26, %v117_v26  ;;  %v81_v29 = vpop.permute.xlu1 %80  ;;  %v85_v30 = vpop.permute.xlu0 %84 }
  0x97   :  { %v105_v31 = vsel %vm24_vm0, %v44_v10, %v81_v29  ;;  %v106_v32 = vsel %vm24_vm0, %v49_v12, %v85_v30 }
  0x98   :  { %v467_v33 = vmul.f32 -120.125, %v126_v27  ;;  %v469_v34 = vmul.f32 -120.125, %v125_v28  ;;  %v119_v35 = vsub.f32 %v105_v31, %v327_v20  ;;  %v120_v36 = vsub.f32 %v106_v32, %v327_v20 }
  0x9a   :  { %v127_v37 = vmul.f32 %v119_v35, %v119_v35  ;;  %v128_v38 = vmul.f32 %v120_v36, %v120_v36  ;;  %v89_v39 = vpop.permute.xlu1 %88  ;;  %v93_v40 = vpop.permute.xlu0 %92  ;;  %v142_v41 = vsel %vm24_vm0, %v467_v33, -inf  ;;  %v141_v42 = vsel %vm24_vm0, %v469_v34, -inf }
  0x9b   :  { %v107_v43 = vsel %vm24_vm0, %v54_v16, %v89_v39  ;;  %v108_v44 = vsel %vm24_vm0, %v59_v15, %v93_v40  ;;  %151 = vmax.xlane.f32.xlu0 %v142_v41  ;;  %149 = vmax.xlane.f32.xlu1 %v141_v42  ;;  %v167_v5 = vsel %vm26_vm1, %v469_v34, -inf  ;;  %v168_v6 = vsel %vm26_vm1, %v467_v33, -inf }
  0x9c   :  { %v481_v45 = vmul.f32 -120.125, %v127_v37  ;;  %v483_v46 = vmul.f32 -120.125, %v128_v38  ;;  %v121_v47 = vsub.f32 %v107_v43, %v327_v20  ;;  %v122_v48 = vsub.f32 %v108_v44, %v327_v20 }
  0x9e   :  { %v129_v49 = vmul.f32 %v121_v47, %v121_v47  ;;  %v130_v50 = vmul.f32 %v122_v48, %v122_v48  ;;  %v97_v51 = vpop.permute.xlu1 %96  ;;  %v101_v52 = vpop.permute.xlu0 %100  ;;  %v143_v53 = vsel %vm24_vm0, %v481_v45, -inf  ;;  %v144_v54 = vsel %vm24_vm0, %v483_v46, -inf }
  0x9f   :  { %v109_v55 = vsel %vm24_vm0, %v64_v19, %v97_v51  ;;  %v110_v56 = vsel %vm24_vm0, %v69_v18, %v101_v52  ;;  %153 = vmax.xlane.f32.xlu0 %v143_v53  ;;  %155 = vmax.xlane.f32.xlu1 %v144_v54  ;;  %v169_v7 = vsel %vm26_vm1, %v481_v45, -inf  ;;  %v170_v8 = vsel %vm26_vm1, %v483_v46, -inf }
  0xa0   :  { %v495_v57 = vmul.f32 -120.125, %v129_v49  ;;  %v497_v58 = vmul.f32 -120.125, %v130_v50  ;;  %v123_v59 = vsub.f32 %v109_v55, %v327_v20  ;;  %v124_v60 = vsub.f32 %v110_v56, %v327_v20 }
  0xa2   :  { %v131_v61 = vmul.f32 %v123_v59, %v123_v59  ;;  %v132_v62 = vmul.f32 %v124_v60, %v124_v60  ;;  %v145_v63 = vsel %vm24_vm0, %v495_v57, -inf  ;;  %v146_v0 = vsel %vm24_vm0, %v497_v58, -inf }
  0xa3   :  { %157 = vmax.xlane.f32.xlu0 %v145_v63  ;;  %159 = vmax.xlane.f32.xlu1 %v146_v0  ;;  %v171_v9 = vsel %vm26_vm1, %v495_v57, -inf  ;;  %v172_v10 = vsel %vm26_vm1, %v497_v58, -inf }
  0xa4   :  { %v505_v1 = vmul.f32 -120.125, %v131_v61  ;;  %v507_v2 = vmul.f32 -120.125, %v132_v62 }
  0xa6   :  { %v147_v3 = vsel %vm24_vm0, %v505_v1, -inf  ;;  %v148_v4 = vsel %vm24_vm0, %v507_v2, -inf  ;;  %v173_v11 = vsel %vm26_vm1, %v505_v1, -inf  ;;  %v174_v12 = vsel %vm26_vm1, %v507_v2, -inf }
  0xa7   :  { %161 = vmax.xlane.f32.xlu0 %v147_v3  ;;  %163 = vmax.xlane.f32.xlu1 %v148_v4 }
  0xab   :  { %175 = vmax.xlane.f32.xlu0 %v167_v5  ;;  %177 = vmax.xlane.f32.xlu1 %v168_v6 }
  0xaf   :  { %179 = vmax.xlane.f32.xlu0 %v169_v7  ;;  %181 = vmax.xlane.f32.xlu1 %v170_v8 }
  0xb3   :  { %183 = vmax.xlane.f32.xlu0 %v171_v9  ;;  %185 = vmax.xlane.f32.xlu1 %v172_v10 }
  0xb7   :  { %187 = vmax.xlane.f32.xlu0 %v173_v11  ;;  %189 = vmax.xlane.f32.xlu1 %v174_v12 }
 0x128   :  { %v150_v13 = vpop.xlane.xlu1 %149  ;;  %v152_v14 = vpop.xlane.xlu0 %151 }
 0x12c   :  { %v156_v15 = vpop.xlane.xlu1 %155  ;;  %v154_v16 = vpop.xlane.xlu0 %153 }
 0x130   :  { %v160_v18 = vpop.xlane.xlu1 %159  ;;  %v158_v19 = vpop.xlane.xlu0 %157 }
 0x134   :  { %v164_v20 = vpop.xlane.xlu1 %163  ;;  %v162_v21 = vpop.xlane.xlu0 %161 }
 0x138   :  { %v178_v22 = vpop.xlane.xlu1 %177  ;;  %v176_v23 = vpop.xlane.xlu0 %175 }
 0x139   :  { %v192_v24 = vsel %vm24_vm0, %v152_v14, %v178_v22  ;;  %v191_v25 = vsel %vm24_vm0, %v150_v13, %v176_v23 }
 0x13a   :  { %v200_v26 = vsub.f32 %v467_v33, %v192_v24  ;;  %v199_v27 = vsub.f32 %v469_v34, %v191_v25 }
 0x13c   :  { %v209_v28 = vmul.f32 1.442695, %v200_v26  ;;  %v207_v29 = vmul.f32 1.442695, %v199_v27  ;;  %v182_v30 = vpop.xlane.xlu1 %181  ;;  %v180_v31 = vpop.xlane.xlu0 %179 }
 0x13d   :  { %v194_v32 = vsel %vm24_vm0, %v156_v15, %v182_v30  ;;  %v193_v35 = vsel %vm24_vm0, %v154_v16, %v180_v31 }
 0x13e   :  { %337 = vpow2.f32 %v209_v28  ;;  %v202_v36 = vsub.f32 %v483_v46, %v194_v32  ;;  %v201_v37 = vsub.f32 %v481_v45, %v193_v35 }
 0x13f   :  { %339 = vpow2.f32 %v207_v29 }
 0x140   :  { %v213_v38 = vmul.f32 1.442695, %v202_v36  ;;  %v211_v33 = vmul.f32 1.442695, %v201_v37  ;;  %v186_v39 = vpop.xlane.xlu1 %185  ;;  %v184_v34 = vpop.xlane.xlu0 %183 }
 0x141   :  { %v196_v40 = vsel %vm24_vm0, %v160_v18, %v186_v39  ;;  %v195_v41 = vsel %vm24_vm0, %v158_v19, %v184_v34 }
 0x142   :  { %341 = vpow2.f32 %v213_v38  ;;  %v204_v42 = vsub.f32 %v497_v58, %v196_v40  ;;  %v203_v43 = vsub.f32 %v495_v57, %v195_v41 }
 0x143   :  { %343 = vpow2.f32 %v211_v33 }
 0x144   :  { %v217_v44 = vmul.f32 1.442695, %v204_v42  ;;  %v215_v46 = vmul.f32 1.442695, %v203_v43  ;;  %v190_v45 = vpop.xlane.xlu1 %189  ;;  %v188_v47 = vpop.xlane.xlu0 %187 }
 0x145   :  { %v198_v48 = vsel %vm24_vm0, %v164_v20, %v190_v45  ;;  %v197_v49 = vsel %vm24_vm0, %v162_v21, %v188_v47 }
 0x146   :  { %345 = vpow2.f32 %v217_v44  ;;  %v206_v50 = vsub.f32 %v507_v2, %v198_v48  ;;  %v205_v51 = vsub.f32 %v505_v1, %v197_v49 }
 0x147   :  { %347 = vpow2.f32 %v215_v46 }
 0x148   :  { %v564_v52 = vpop.eup %337  ;;  %v221_v53 = vmul.f32 1.442695, %v206_v50  ;;  %v219_v54 = vmul.f32 1.442695, %v205_v51 }
 0x149   :  { %v566_v55 = vpop.eup %339  ;;  %v224_v56 = vsel %vm24_vm0, %v564_v52, 0.0  ;;  %v248_v6 = vsel %vm26_vm1, %v564_v52, 0.0 }
 0x14a   :  { %349 = vpow2.f32 %v221_v53  ;;  %233 = vadd.xlane.f32.xlu1 %v224_v56  ;;  %v223_v57 = vsel %vm24_vm0, %v566_v55, 0.0  ;;  %v247_v7 = vsel %vm26_vm1, %v566_v55, 0.0 }
 0x14b   :  { %351 = vpow2.f32 %v219_v54  ;;  %231 = vadd.xlane.f32.xlu0 %v223_v57 }
 0x14c   :  { %v574_v58 = vpop.eup %341 }
 0x14d   :  { %v576_v59 = vpop.eup %343  ;;  %v226_v60 = vsel %vm24_vm0, %v574_v58, 0.0  ;;  %v250_v8 = vsel %vm26_vm1, %v574_v58, 0.0 }
 0x14e   :  { %237 = vadd.xlane.f32.xlu1 %v226_v60  ;;  %v225_v61 = vsel %vm24_vm0, %v576_v59, 0.0  ;;  %v249_v9 = vsel %vm26_vm1, %v576_v59, 0.0 }
 0x14f   :  { %235 = vadd.xlane.f32.xlu0 %v225_v61 }
 0x150   :  { %v584_v62 = vpop.eup %345 }
 0x151   :  { %v586_v63 = vpop.eup %347  ;;  %v228_v0 = vsel %vm24_vm0, %v584_v62, 0.0  ;;  %v252_v10 = vsel %vm26_vm1, %v584_v62, 0.0 }
 0x152   :  { %241 = vadd.xlane.f32.xlu1 %v228_v0  ;;  %v227_v1 = vsel %vm24_vm0, %v586_v63, 0.0  ;;  %v251_v11 = vsel %vm26_vm1, %v586_v63, 0.0 }
 0x153   :  { %239 = vadd.xlane.f32.xlu0 %v227_v1 }
 0x154   :  { %v594_v2 = vpop.eup %349 }
 0x155   :  { %v596_v3 = vpop.eup %351  ;;  %v230_v4 = vsel %vm24_vm0, %v594_v2, 0.0  ;;  %v254_v12 = vsel %vm26_vm1, %v594_v2, 0.0 }
 0x156   :  { %245 = vadd.xlane.f32.xlu1 %v230_v4  ;;  %v229_v5 = vsel %vm24_vm0, %v596_v3, 0.0  ;;  %v253_v13 = vsel %vm26_vm1, %v596_v3, 0.0 }
 0x157   :  { %243 = vadd.xlane.f32.xlu0 %v229_v5 }
 0x15a   :  { %257 = vadd.xlane.f32.xlu1 %v248_v6 }
 0x15b   :  { %255 = vadd.xlane.f32.xlu0 %v247_v7 }
 0x15e   :  { %261 = vadd.xlane.f32.xlu1 %v250_v8 }
 0x15f   :  { %259 = vadd.xlane.f32.xlu0 %v249_v9 }
 0x162   :  { %265 = vadd.xlane.f32.xlu1 %v252_v10 }
 0x163   :  { %263 = vadd.xlane.f32.xlu0 %v251_v11 }
 0x166   :  { %269 = vadd.xlane.f32.xlu1 %v254_v12 }
 0x167   :  { %267 = vadd.xlane.f32.xlu0 %v253_v13 }
 0x1d7   :  { %v234_v14 = vpop.xlane.xlu1 %233 }
 0x1d8   :  { %v232_v15 = vpop.xlane.xlu0 %231  ;;  %353 = vrcp.f32 %v234_v14 }
 0x1d9   :  { %355 = vrcp.f32 %v232_v15 }
 0x1db   :  { %v238_v16 = vpop.xlane.xlu1 %237 }
 0x1dc   :  { %v236_v18 = vpop.xlane.xlu0 %235 }
 0x1df   :  { %v242_v19 = vpop.xlane.xlu1 %241 }
 0x1e0   :  { %v240_v20 = vpop.xlane.xlu0 %239 }
 0x1e2   :  { %v354_v28 = vpop.eup %353 }
 0x1e3   :  { %v246_v21 = vpop.xlane.xlu1 %245  ;;  %v356_v30 = vpop.eup %355 }
 0x1e4   :  { %v244_v22 = vpop.xlane.xlu0 %243 }
 0x1e7   :  { %v258_v23 = vpop.xlane.xlu1 %257 }
 0x1e8   :  { %357 = vrcp.f32 %v258_v23  ;;  %v256_v24 = vpop.xlane.xlu0 %255 }
 0x1e9   :  { %359 = vrcp.f32 %v256_v24 }
 0x1ea   :  { %361 = vrcp.f32 %v238_v16 }
 0x1eb   :  { %363 = vrcp.f32 %v236_v18  ;;  %v262_v25 = vpop.xlane.xlu1 %261 }
 0x1ec   :  { %365 = vrcp.f32 %v262_v25  ;;  %v260_v26 = vpop.xlane.xlu0 %259 }
 0x1ed   :  { %367 = vrcp.f32 %v260_v26 }
 0x1ee   :  { %369 = vrcp.f32 %v242_v19 }
 0x1ef   :  { %371 = vrcp.f32 %v240_v20  ;;  %v266_v27 = vpop.xlane.xlu1 %265 }
 0x1f0   :  { %373 = vrcp.f32 %v266_v27  ;;  %v264_v29 = vpop.xlane.xlu0 %263 }
 0x1f1   :  { %375 = vrcp.f32 %v264_v29 }
 0x1f2   :  { %v358_v31 = vpop.eup %357  ;;  %377 = vrcp.f32 %v246_v21 }
 0x1f3   :  { %v360_v32 = vpop.eup %359  ;;  %379 = vrcp.f32 %v244_v22  ;;  %v288_v35 = vsel %vm24_vm0, %v354_v28, %v358_v31  ;;  %v270_v36 = vpop.xlane.xlu1 %269 }
 0x1f4   :  { %v362_v37 = vpop.eup %361  ;;  %v296_v38 = vmul.f32 %v564_v52, %v288_v35  ;;  %v287_v33 = vsel %vm24_vm0, %v356_v30, %v360_v32  ;;  %381 = vrcp.f32 %v270_v36  ;;  %v268_v39 = vpop.xlane.xlu0 %267 }
 0x1f5   :  { %v364_v34 = vpop.eup %363  ;;  %v295_v40 = vmul.f32 %v566_v55, %v287_v33  ;;  %383 = vrcp.f32 %v268_v39 }
 0x1f6   :  { %v366_v41 = vpop.eup %365  ;;  %304 = vst [vmem:[#allocation2 + $0x8] sm:$0xff] %v296_v38 }
 0x1f7   :  { %v368_v42 = vpop.eup %367  ;;  %303 = vst [vmem:[#allocation2] sm:$0xff] %v295_v40  ;;  %v290_v43 = vsel %vm24_vm0, %v362_v37, %v366_v41 }
 0x1f8   :  { %v370_v44 = vpop.eup %369  ;;  %v298_v46 = vmul.f32 %v574_v58, %v290_v43  ;;  %v289_v45 = vsel %vm24_vm0, %v364_v34, %v368_v42 }
 0x1f9   :  { %v372_v47 = vpop.eup %371  ;;  %v297_v48 = vmul.f32 %v576_v59, %v289_v45 }
 0x1fa   :  { %v374_v49 = vpop.eup %373  ;;  %306 = vst [vmem:[#allocation2 + $0x18] sm:$0xff] %v298_v46 }
 0x1fb   :  { %v376_v50 = vpop.eup %375  ;;  %305 = vst [vmem:[#allocation2 + $0x10] sm:$0xff] %v297_v48  ;;  %v292_v51 = vsel %vm24_vm0, %v370_v44, %v374_v49 }
 0x1fc   :  { %v378_v52 = vpop.eup %377  ;;  %v300_v53 = vmul.f32 %v584_v62, %v292_v51  ;;  %v291_v54 = vsel %vm24_vm0, %v372_v47, %v376_v50 }
 0x1fd   :  { %v380_v55 = vpop.eup %379  ;;  %v299_v56 = vmul.f32 %v586_v63, %v291_v54 }
 0x1fe   :  { %v382_v57 = vpop.eup %381  ;;  %308 = vst [vmem:[#allocation2 + $0x28] sm:$0xff] %v300_v53 }
 0x1ff   :  { %v384_v58 = vpop.eup %383  ;;  %307 = vst [vmem:[#allocation2 + $0x20] sm:$0xff] %v299_v56  ;;  %v294_v59 = vsel %vm24_vm0, %v378_v52, %v382_v57 }
 0x200   :  { %v302_v60 = vmul.f32 %v594_v2, %v294_v59  ;;  %v293_v61 = vsel %vm24_vm0, %v380_v55, %v384_v58 }
 0x201   :  { %v301_v62 = vmul.f32 %v596_v3, %v293_v61 }
 0x202   :  { %310 = vst [vmem:[#allocation2 + $0x38] sm:$0xff] %v302_v60 }
 0x203   :  { %309 = vst [vmem:[#allocation2 + $0x30] sm:$0xff] %v301_v62 }
 0x204   :  { %396 = shalt.err (!%p393_p4)
}
 0x205   :  { %s397_s30 = scalar_lea.hbm %s666_s2, 1024 }
 0x206   :  { %p398_p5 = scmp.ne.s32.totalorder %s666_s2, %s397_s30  ;;  %p401_p6 = scmp.lt.u32.totalorder %s397_s30, %s666_s2 }
 0x208   :  { %p403_p7 = pnand %p401_p6, %p398_p5 }
 0x20a   :  { %406 = shalt.err (!%p403_p7)
}
 0x20b   :  { %s412_s7 = smov 128   ;;  %s413_s8 = smov 8  }
 0x20c   :  { %322 = dma.vmem_to_hbm [thread:$0]  %s317_s26, 1024, %s666_s2, [#allocation3], %s412_s7, %s412_s7, %s413_s8  }
 0x20d   :  { %407 = dma.done.wait [#allocation3], 1024  }
 0x20e   :  { %408 = vsyncadd [#allocation3], 4294966272 }
 0x20f   :  { %326 = vsyncpa [#allocation3], 1 }

</bundles_post_ra>
